<compile_context>
chip_gen: v7x
topology: tpu7x:2x2x1
jax: 0.10.0
libtpu: 0.0.40
codegen_flags: <defaults>
</compile_context>

<pallas_src>
import jax
import jax.numpy as jnp
from jax.experimental import pallas as pl
from jax.experimental.pallas import tpu as pltpu


def _round_up(x, m):
    return ((x + m - 1) // m) * m


def output_kernel(x_ref, w_ref, b_ref, o_ref, acc_ref):
    # Grid axes: (j = vocab tile, i = row tile, k = hidden/reduction tile)
    # x_ref: (tm, tk)  bf16 activations tile
    # w_ref: (tk, tn)  bf16 pre-transposed weight tile
    # b_ref: (1,  tn)  f32 bias tile (broadcast over rows)
    # o_ref: (tm, tn)  logits tile
    # acc_ref: (tm, tn) f32 accumulator (scratch, persists across k)
    k = pl.program_id(2)

    @pl.when(k == 0)
    def _init():
        acc_ref[...] = jnp.zeros_like(acc_ref)

    acc_ref[...] += jnp.dot(x_ref[...], w_ref[...],
                            preferred_element_type=jnp.float32)

    @pl.when(k == pl.num_programs(2) - 1)
    def _finalize():
        o_ref[...] = (acc_ref[...] + b_ref[...]).astype(o_ref.dtype)


def prepare_output_params(weight, bias, *, compute_dtype=jnp.bfloat16):
    """One-time parameter prep (hoisted out of the per-call forward path).

    weight: (V, H) nn.Linear layout  ->  (H, V) transposed, compute_dtype
    bias:   (V,)                      ->  (1, V) float32
    """
    wt = jnp.asarray(weight).T.astype(compute_dtype)            # (H, V)
    b2 = jnp.asarray(bias, dtype=jnp.float32).reshape(1, -1)    # (1, V)
    return wt, b2


def _pick_tiles(M, H, V):
    # Row tile: small M -> single sublane-aligned tile; large M -> 256.
    if M <= 256:
        tm = _round_up(M, 8)
    else:
        tm = 256
    # Vocab tile (lane axis): full V if modest, else a 128-aligned chunk.
    tn = V if V <= 1024 else 1024
    # Hidden tile: full H if modest, else a divisor that is a multiple of 128
    # (exact division keeps garbage out of the reduction).
    if H <= 1024:
        tk = H
    elif H % 512 == 0:
        tk = 512
    elif H % 256 == 0:
        tk = 256
    elif H % 128 == 0:
        tk = 128
    else:
        tk = H  # fall back to unblocked K (correctness over VMEM pressure)
    return tm, tn, tk


def output_forward(txt_emb, wt, bias2d, *, out_dtype=jnp.float32,
                   tm=None, tn=None, tk=None):
    """Forward of the `Output` module.

    txt_emb: (B, S, H) float
    wt:      (H, V)    pre-transposed weight from prepare_output_params
    bias2d:  (1, V)    f32 bias (banned indices already set to -1e9)
    returns: (B, S, V) logits in out_dtype (f32 by default for softmax users)
    """
    B, S, H = txt_emb.shape
    H2, V = wt.shape
    assert H == H2, "hidden_size mismatch"
    assert bias2d.shape == (1, V)

    M = B * S
    x = txt_emb.reshape(M, H).astype(wt.dtype)   # collapse batch*seq; bf16

    tm0, tn0, tk0 = _pick_tiles(M, H, V)
    tm = tm0 if tm is None else tm
    tn = tn0 if tn is None else tn
    tk = tk0 if tk is None else tk

    grid = (pl.cdiv(V, tn), pl.cdiv(M, tm), pl.cdiv(H, tk))

    itemsize = jnp.dtype(wt.dtype).itemsize
    cost = pl.CostEstimate(
        flops=2 * M * H * V,
        transcendentals=0,
        bytes_accessed=(H * V * itemsize            # weight stream
                        + M * H * itemsize          # activations
                        + V * 4                     # bias
                        + M * V * jnp.dtype(out_dtype).itemsize))  # logits

    out = pl.pallas_call(
        output_kernel,
        out_shape=jax.ShapeDtypeStruct((M, V), out_dtype),
        grid_spec=pltpu.PrefetchScalarGridSpec(
            num_scalar_prefetch=0,
            grid=grid,
            in_specs=[
                pl.BlockSpec((tm, tk), lambda j, i, k: (i, k)),   # activations
                pl.BlockSpec((tk, tn), lambda j, i, k: (k, j)),   # weight (H,V)
                pl.BlockSpec((1, tn), lambda j, i, k: (0, j)),    # bias
            ],
            out_specs=pl.BlockSpec((tm, tn), lambda j, i, k: (i, j)),
            scratch_shapes=[pltpu.VMEM((tm, tn), jnp.float32)],
        ),
        compiler_params=pltpu.CompilerParams(
            # vocab axis leading + parallel -> megacore shards weight columns;
            # rows are a plain loop; K (reduction w/ accumulator) last.
            dimension_semantics=("parallel", "arbitrary", "arbitrary"),
            vmem_limit_bytes=64 * 1024 * 1024,
        ),
        cost_estimate=cost,
    )(x, wt, bias2d)

    return out.reshape(B, S, V)


if __name__ == "__main__":
    # Small shapes consistent with the module's forward signature.
    hidden_size = 32
    vocab_size = 128            # lane-dense output (multiple of 128)
    banned_indices = [0, 1, 2]  # e.g. PAD, UNK, SOS
    batch, seq_len = 2, 8

    key = jax.random.PRNGKey(0)
    k_w, k_x = jax.random.split(key, 2)

    # nn.Linear default init: weight ~ U(-1/sqrt(H), 1/sqrt(H)).
    bound = 1.0 / (hidden_size ** 0.5)
    weight = jax.random.uniform(
        k_w, (vocab_size, hidden_size), minval=-bound, maxval=bound,
        dtype=jnp.float32)
    # Constructor semantics: bias zeroed, banned indices set to -1e9.
    bias = jnp.zeros((vocab_size,), dtype=jnp.float32)
    bias = bias.at[jnp.array(banned_indices)].set(-1.0e9)
    # TODO(synk): adapt() (frequency-based bias init) is host-side parameter
    # setup, not part of the forward pass — it would just produce a different
    # `bias` vector fed into prepare_output_params.

    txt_emb = jax.random.normal(
        k_x, (batch, seq_len, hidden_size), dtype=jnp.float32)

    # One-time parameter prep (transpose + bf16 cast hoisted out of forward).
    wt, bias2d = prepare_output_params(weight, bias)

    logits = output_forward(txt_emb, wt, bias2d)
    logits = jax.block_until_ready(logits)
    assert logits.shape == (batch, seq_len, vocab_size)
    assert logits.dtype == jnp.float32

    # Tight reference: same bf16-rounded inputs, f32 accumulate + f32 bias.
    x_bf = txt_emb.astype(jnp.bfloat16).astype(jnp.float32)
    w_bf = wt.astype(jnp.float32)
    ref_bf16 = (x_bf.reshape(-1, hidden_size) @ w_bf).reshape(
        batch, seq_len, vocab_size) + bias[None, None, :]
    assert jnp.allclose(logits, ref_bf16, atol=1e-4, rtol=1e-4)

    # Sanity check against the full-f32 PyTorch-equivalent reference.
    ref_f32 = txt_emb @ weight.T + bias[None, None, :]
    assert jnp.allclose(logits, ref_f32, atol=3e-2, rtol=3e-2)

    print("KERNEL_OK")
</pallas_src>

<mosaic_0001>
module attributes {stable_mosaic.version = 11 : i64} {
  func.func @output_kernel(%arg0: i32, %arg1: i32, %arg2: i32, %arg3: memref<16x32xbf16, #tpu.memory_space<vmem>>, %arg4: memref<32x128xbf16, #tpu.memory_space<vmem>>, %arg5: memref<1x128xf32, #tpu.memory_space<vmem>>, %arg6: memref<16x128xf32, #tpu.memory_space<vmem>>, %arg7: memref<16x128xf32, #tpu.memory_space<vmem>>) attributes {dimension_semantics = [#tpu.dimension_semantics<parallel>, #tpu.dimension_semantics<arbitrary>, #tpu.dimension_semantics<arbitrary>], iteration_bounds = array<i64: 1, 1, 1>, scalar_prefetch = 0 : i64, scratch_operands = 1 : i64, tpu.core_type = #tpu.core_type<tc>, window_params = [{transform_indices = @transform_0, window_bounds = array<i64: 16, 32>}, {transform_indices = @transform_1, window_bounds = array<i64: 32, 128>}, {transform_indices = @transform_2, window_bounds = array<i64: 1, 128>}, {transform_indices = @transform_3, window_bounds = array<i64: 16, 128>}]} {
    %c0_i32 = arith.constant 0 : i32
    %0 = arith.cmpi eq, %arg2, %c0_i32 : i32
    %1 = arith.extui %0 : i1 to i32
    %c0_i32_0 = arith.constant 0 : i32
    %2 = arith.cmpi ne, %1, %c0_i32_0 : i32
    scf.if %2 {
      %cst_10 = arith.constant 0.000000e+00 : f32
      %12 = vector.broadcast %cst_10 : f32 to vector<16x128xf32>
      %c0_11 = arith.constant 0 : index
      %c0_12 = arith.constant 0 : index
      %13 = vector.load %arg7[%c0_11, %c0_12] : memref<16x128xf32, #tpu.memory_space<vmem>>, vector<16x128xf32>
      tpu.vector_store %arg7[%c0_11, %c0_12], %12 {strides = array<i32>} : memref<16x128xf32, #tpu.memory_space<vmem>>, vector<16x128xf32>,
    } else {
    }
    %c0 = arith.constant 0 : index
    %c0_1 = arith.constant 0 : index
    %3 = vector.load %arg7[%c0, %c0_1] : memref<16x128xf32, #tpu.memory_space<vmem>>, vector<16x128xf32>
    %c0_2 = arith.constant 0 : index
    %c0_3 = arith.constant 0 : index
    %4 = vector.load %arg3[%c0_2, %c0_3] : memref<16x32xbf16, #tpu.memory_space<vmem>>, vector<16x32xbf16>
    %c0_4 = arith.constant 0 : index
    %c0_5 = arith.constant 0 : index
    %5 = vector.load %arg4[%c0_4, %c0_5] : memref<32x128xbf16, #tpu.memory_space<vmem>>, vector<32x128xbf16>
    %cst = arith.constant dense<0.000000e+00> : vector<16x128xf32>
    %6 = tpu.matmul %4, %5, %cst {dimension_numbers = #tpu.dot_dimension_numbers<[1], [0], [0], [1], [0, 0, 1, 1], [], []>} : vector<16x32xbf16>, vector<32x128xbf16>, vector<16x128xf32> -> vector<16x128xf32>
    %7 = arith.addf %3, %6 : vector<16x128xf32>
    %c0_6 = arith.constant 0 : index
    %c0_7 = arith.constant 0 : index
    %8 = vector.load %arg7[%c0_6, %c0_7] : memref<16x128xf32, #tpu.memory_space<vmem>>, vector<16x128xf32>
    tpu.vector_store %arg7[%c0_6, %c0_7], %7 {strides = array<i32>} : memref<16x128xf32, #tpu.memory_space<vmem>>, vector<16x128xf32>,
    %c0_i32_8 = arith.constant 0 : i32
    %9 = arith.cmpi eq, %arg2, %c0_i32_8 : i32
    %10 = arith.extui %9 : i1 to i32
    %c0_i32_9 = arith.constant 0 : i32
    %11 = arith.cmpi ne, %10, %c0_i32_9 : i32
    scf.if %11 {
      %c0_10 = arith.constant 0 : index
      %c0_11 = arith.constant 0 : index
      %12 = vector.load %arg7[%c0_10, %c0_11] : memref<16x128xf32, #tpu.memory_space<vmem>>, vector<16x128xf32>
      %c0_12 = arith.constant 0 : index
      %c0_13 = arith.constant 0 : index
      %13 = vector.load %arg5[%c0_12, %c0_13] : memref<1x128xf32, #tpu.memory_space<vmem>>, vector<1x128xf32>
      %14 = vector.broadcast %13 : vector<1x128xf32> to vector<16x128xf32>
      %15 = arith.addf %12, %14 : vector<16x128xf32>
      %c0_14 = arith.constant 0 : index
      %c0_15 = arith.constant 0 : index
      %16 = vector.load %arg6[%c0_14, %c0_15] : memref<16x128xf32, #tpu.memory_space<vmem>>, vector<16x128xf32>
      tpu.vector_store %arg6[%c0_14, %c0_15], %15 {strides = array<i32>} : memref<16x128xf32, #tpu.memory_space<vmem>>, vector<16x128xf32>,
    } else {
    }
    return
  }
  func.func @transform_0(%arg0: i32, %arg1: i32, %arg2: i32) -> (i32, i32) {
    %c0_i32 = arith.constant 0 : i32
    return %arg1, %arg2 : i32, i32
  }
  func.func @transform_1(%arg0: i32, %arg1: i32, %arg2: i32) -> (i32, i32) {
    %c0_i32 = arith.constant 0 : i32
    return %arg2, %arg0 : i32, i32
  }
  func.func @transform_2(%arg0: i32, %arg1: i32, %arg2: i32) -> (i32, i32) {
    %c0_i32 = arith.constant 0 : i32
    %c0_i32_0 = arith.constant 0 : i32
    return %c0_i32, %arg0 : i32, i32
  }
  func.func @transform_3(%arg0: i32, %arg1: i32, %arg2: i32) -> (i32, i32) {
    %c0_i32 = arith.constant 0 : i32
    return %arg1, %arg0 : i32, i32
  }
}

</mosaic_0001>

<bundles_post_ra>
// kernel: tpu_custom_call.1
= control target key start
LH: loop header
LB: loop body
LE: loop exit
PB: predicated region body
PF: predicated region fallthrough
CT: control target
= control target key end

     0   :  { %8 = vsyncpa [#allocation4], 0  ;;  %s377_s0 = inlined_call_operand.hbm [shape: bf16[16,32], index: 0, kind: input, shape index: {}]   ;;  %s378_s1 = inlined_call_operand.hbm [shape: bf16[32,128], index: 1, kind: input, shape index: {}]   ;;  %s379_s2 = inlined_call_operand.hbm [shape: f32[1,128], index: 2, kind: input, shape index: {}]   ;;  %s380_s3 = inlined_call_operand.hbm [shape: f32[16,128], index: 3, kind: output, shape index: {}]  }
   0x1   :  { %9 = vsyncpa [#allocation7], 0 }
   0x2   :  { %10 = vsyncpa [#allocation5], 0  ;;  %s292_s12 = smov [#allocation6]   ;;  %s293_s14 = smov [#allocation3]  }
   0x3   :  { %s28_s13 = sshll.u32 %s292_s12, 4  ;;  %s16_s15 = sshll.u32 %s293_s14, 4  ;;  %s29_s13 = int_to_ptr.vmem [resolvable:$true] %s28_s13  ;;  %s322_s15 = int_to_ptr.vmem [resolvable:$true] %s16_s15 }
   0x4   :  { %s198_s18 = scalar_lea.hbm %s378_s1, 256 }
   0x5   :  { %p199_p0 = scmp.ne.s32.totalorder %s378_s1, %s198_s18  ;;  %p202_p1 = scmp.lt.u32.totalorder %s198_s18, %s378_s1 }
   0x7   :  { %p204_p2 = pnand %p202_p1, %p199_p0 }
   0x9   :  { %207 = shalt.err (!%p204_p2)
}
   0xa   :  { %s208_s23 = scalar_lea.vmem %s29_s13, 256  ;;  %p213_p4 = scmp.lt.s32.totalorder %s29_s13, %s29_s13 }
   0xb   :  { %p209_p3 = scmp.ne.s32.totalorder %s29_s13, %s208_s23  ;;  %p214_p5 = scmp.lt.s32.totalorder %s208_s23, %s208_s23 }
   0xd   :  { %p215_p6 = por %p214_p5, %p213_p4 }
   0xf   :  { %p216_p7 = pnand %p215_p6, %p209_p3 }
  0x11   :  { %219 = shalt.err (!%p216_p7)
}
  0x12   :  { %s294_s24 = smov 64   ;;  %s295_s25 = smov 4  }
  0x13   :  { %34 = dma.hbm_to_vmem [thread:$0]  %s378_s1, 256, %s29_s13, [#allocation7], %s294_s24, %s294_s24, %s295_s25  }
  0x14   :  { %s220_s30 = scalar_lea.hbm %s377_s0, 128 }
  0x15   :  { %p221_p8 = scmp.ne.s32.totalorder %s377_s0, %s220_s30  ;;  %p224_p9 = scmp.lt.u32.totalorder %s220_s30, %s377_s0 }
  0x17   :  { %p226_p10 = pnand %p224_p9, %p221_p8 }
  0x19   :  { %229 = shalt.err (!%p226_p10)
}
  0x1a   :  { %s230_s8 = scalar_lea.vmem %s322_s15, 128  ;;  %p235_p12 = scmp.lt.s32.totalorder %s322_s15, %s322_s15 }
  0x1b   :  { %p231_p11 = scmp.ne.s32.totalorder %s322_s15, %s230_s8  ;;  %p236_p13 = scmp.lt.s32.totalorder %s230_s8, %s230_s8 }
  0x1d   :  { %p237_p0 = por %p236_p13, %p235_p12 }
  0x1f   :  { %p238_p1 = pnand %p237_p0, %p231_p11 }
  0x21   :  { %241 = shalt.err (!%p238_p1)
}
  0x22   :  { %22 = dma.hbm_to_vmem [thread:$0]  %s377_s0, 128, %s322_s15, [#allocation4], %s294_s24, %s294_s24, %s295_s25  }
  0x23   :  { %s296_s10 = smov [#allocation8]   ;;  %s242_s14 = scalar_lea.hbm %s379_s2, 16 }
  0x24   :  { %s41_s11 = sshll.u32 %s296_s10, 4  ;;  %p243_p2 = scmp.ne.s32.totalorder %s379_s2, %s242_s14  ;;  %s42_s11 = int_to_ptr.vmem [resolvable:$true] %s41_s11 }
  0x25   :  { %p246_p3 = scmp.lt.u32.totalorder %s242_s14, %s379_s2 }
  0x27   :  { %p248_p4 = pnand %p246_p3, %p243_p2 }
  0x29   :  { %251 = shalt.err (!%p248_p4)
}
  0x2a   :  { %s252_s20 = scalar_lea.vmem %s42_s11, 16  ;;  %s256_s0 = scalar_lea.vmem %s42_s11, 32 }
  0x2b   :  { %p253_p5 = scmp.ne.s32.totalorder %s42_s11, %s252_s20  ;;  %p257_p6 = scmp.lt.s32.totalorder %s42_s11, %s42_s11 }
  0x2c   :  { %p258_p7 = scmp.lt.s32.totalorder %s256_s0, %s252_s20 }
  0x2e   :  { %p259_p8 = por %p258_p7, %p257_p6 }
  0x30   :  { %p260_p9 = pnand %p259_p8, %p253_p5 }
  0x32   :  { %263 = shalt.err (!%p260_p9)
}
  0x33   :  { %44 = dma.hbm_to_vmem [thread:$0]  %s379_s2, 16, %s42_s11, [#allocation7]  }
  0x34   :  { %286 = dma.done.wait [#allocation4], 128  }
  0x35   :  { %287 = vsyncadd [#allocation4], 4294967168 }
  0x36   :  { %288 = dma.done.wait [#allocation7], 272  }
  0x37   :  { %289 = vsyncadd [#allocation7], 4294967024  ;;  %v297_v0 = vmov 0.0   ;;  %vm298_vm0 = vmmov 0   ;;  %v195_v1 = vld [vmem:[#allocation6] sm:$0xff]   ;;  %v196_v2 = vld [vmem:[#allocation6 + $0x8] sm:$0xff]  }
  0x38   :  { %177 = vmatprep.subr.bf16.mxu0 %v297_v0  ;;  %181 = vmatprep.mubr.msk.bf16.mxu0 %vm298_vm0, %v297_v0  ;;  %v197_v3 = vld [vmem:[#allocation3] sm:$0xff]   ;;  %vm86_vm1 = vcmask 261120   ;;  %v173_v4 = vld [vmem:[#allocation8] ss:$0 sm:$0xff]  ;;  %s299_s22 = smov [#allocation9]  }
  0x39   :  { %178 = vmatpush3.bf16.msra.mxu0 %v195_v1  ;;  %s156_s23 = sshll.u32 %s299_s22, 4  ;;  %s157_s23 = int_to_ptr.vmem [resolvable:$true] %s156_s23 }
  0x3a   :  { %179 = vmatprep.subr.bf16.mxu0 %v297_v0  ;;  %s264_s2 = scalar_lea.vmem %s157_s23, 256  ;;  %p269_p11 = scmp.lt.s32.totalorder %s157_s23, %s157_s23 }
  0x3b   :  { %p265_p10 = scmp.ne.s32.totalorder %s157_s23, %s264_s2  ;;  %p270_p12 = scmp.lt.s32.totalorder %s264_s2, %s264_s2 }
  0x3d   :  { %180 = vmatpush3.bf16.msra.mxu0 %v196_v2  ;;  %p271_p13 = por %p270_p12, %p269_p11 }
  0x3f   :  { %p272_p0 = pnand %p271_p13, %p265_p10 }
  0x40   :  { %182 = vmatmul.mubr.msk.bf16.vlgmr.msra.gmra.mrb[0].mxu0 %vm86_vm1, %v197_v3 }
 0x113   :  { %v124_v5 = vpop.f32.mrb[0].mxu0 }
 0x114   :  { %v147_v6 = vadd.f32 %v173_v4, %v124_v5  ;;  %v183_v7 = vpop.f32.mrb[1].mxu0 }
 0x115   :  { %v127_v8 = vpop.f32.mrb[2].mxu0 }
 0x116   :  { %149 = vst [vmem:[#allocation9] sm:$0xff] %v147_v6  ;;  %v148_v9 = vadd.f32 %v173_v4, %v127_v8  ;;  %v184_v10 = vpop.f32.mrb[3].mxu0 }
 0x118   :  { %150 = vst [vmem:[#allocation9 + $0x8] sm:$0xff] %v148_v9 }
 0x119   :  { %275 = shalt.err (!%p272_p0)
}
 0x11a   :  { %s276_s26 = scalar_lea.hbm %s380_s3, 256 }
 0x11b   :  { %p277_p1 = scmp.ne.s32.totalorder %s380_s3, %s276_s26  ;;  %p280_p2 = scmp.lt.u32.totalorder %s276_s26, %s380_s3 }
 0x11d   :  { %p282_p3 = pnand %p280_p2, %p277_p1 }
 0x11f   :  { %285 = shalt.err (!%p282_p3)
}
 0x120   :  { %s300_s4 = smov 128   ;;  %s301_s5 = smov 8  }
 0x121   :  { %162 = dma.vmem_to_hbm [thread:$0]  %s157_s23, 256, %s380_s3, [#allocation5], %s300_s4, %s300_s4, %s301_s5  }
 0x122   :  { %290 = dma.done.wait [#allocation5], 256  }
 0x123   :  { %291 = vsyncadd [#allocation5], 4294967040 }
 0x124   :  { %166 = vsyncpa [#allocation4], 1 }
 0x125   :  { %167 = vsyncpa [#allocation7], 1 }
 0x126   :  { %168 = vsyncpa [#allocation5], 1 }

</bundles_post_ra>
